<compile_context>
chip_gen: v5e
topology: v5e:2x2
jax: 0.10.0
libtpu: 0.0.40
codegen_flags: <defaults>
</compile_context>

<pallas_src>
import jax
import jax.numpy as jnp
from jax import lax
from jax.experimental import pallas as pl
from jax.experimental.pallas import tpu as pltpu


def _round_up(x, m):
    return -(-x // m) * m


def _choose_tile(dim, target):
    """Return (tile, padded_dim). Small dims use full-extent blocks (exempt from
    the (8,128) rule); large dims tile at `target` and pad up to a multiple."""
    if dim <= target:
        return dim, dim
    return target, _round_up(dim, target)


def _pad2(a, rows, cols):
    pr, pc = rows - a.shape[0], cols - a.shape[1]
    if pr or pc:
        a = jnp.pad(a, ((0, pr), (0, pc)))
    return a


def _make_kernel(coarse, has_bias, precision):
    """Build the kernel body for (coarse?, bias?) variant.

    Ref order: x, weight, mask, [bias], out, acc_scratch.
    """

    def kernel(*refs):
        x_ref, w_ref, m_ref = refs[0], refs[1], refs[2]
        nxt = 3
        b_ref = refs[nxt] if has_bias else None
        nxt += int(has_bias)
        o_ref = refs[nxt]
        acc_ref = refs[nxt + 1]

        k = pl.program_id(2)

        @pl.when(k == 0)
        def _init():
            acc_ref[...] = jnp.zeros_like(acc_ref)

        if coarse:
            w_tile = w_ref[...]                                   # (tn, tk)
        else:
            # int8 (0/1) mask upcast on the VPU, fused into the weight tile.
            w_tile = w_ref[...] * m_ref[...].astype(w_ref.dtype)  # (tn, tk)

        # y += x @ W.T  (transposed-RHS contraction, no materialized transpose)
        acc_ref[...] += lax.dot_general(
            x_ref[...], w_tile,
            dimension_numbers=(((1,), (1,)), ((), ())),
            preferred_element_type=jnp.float32,
            precision=precision)                                   # (tb, tn)

        @pl.when(k == pl.num_programs(2) - 1)
        def _finalize():
            out = acc_ref[...]
            if coarse:
                # (out, 1) mask applied as a per-row (output-feature) scale.
                out = out * m_ref[...].astype(jnp.float32)         # (1, tn) bcast
            if has_bias:
                out = out + b_ref[...].astype(jnp.float32)         # (1, tn) bcast
            o_ref[...] = out.astype(o_ref.dtype)

    return kernel


def linear_sparse(x, weight, mask, bias=None, *,
                  tb_target=256, tn_target=256, tk_target=512,
                  compress_fine_mask=True):
    """Linear_sparse forward.

    x: (B, in), weight: (out, in), mask: (out, in) or (out, 1), bias: (out,) or None.
    `compress_fine_mask=True` assumes a 0/1 pruning mask (as in the module) and
    streams it as int8 to cut mask HBM traffic 4x.
    """
    B, in_features = x.shape
    out_features = weight.shape[0]

    tb, b_pad = _choose_tile(B, tb_target)
    tn, out_pad = _choose_tile(out_features, tn_target)
    tk, in_pad = _choose_tile(in_features, tk_target)
    grid = (b_pad // tb, out_pad // tn, in_pad // tk)

    coarse = (mask.ndim == 2 and mask.shape[1] == 1 and in_features > 1)
    has_bias = bias is not None

    # Zero-padding preserves the matmul on the valid rows/cols (padded K
    # contributes 0, padded batch/out rows are sliced off below).
    x_p = _pad2(x, b_pad, in_pad)
    w_p = _pad2(weight, out_pad, in_pad)

    in_specs = [
        pl.BlockSpec((tb, tk), lambda b, n, k: (b, k)),   # x
        pl.BlockSpec((tn, tk), lambda b, n, k: (n, k)),   # weight
    ]
    if coarse:
        # (out, 1) -> (1, out) row, streamed only for the finalize scale.
        mask_arg = _pad2(mask.reshape(1, out_features).astype(jnp.float32), 1, out_pad)
        in_specs.append(pl.BlockSpec((1, tn), lambda b, n, k: (0, n)))
    else:
        m_dtype = jnp.int8 if compress_fine_mask else weight.dtype
        mask_arg = _pad2(mask.astype(m_dtype), out_pad, in_pad)
        in_specs.append(pl.BlockSpec((tn, tk), lambda b, n, k: (n, k)))

    args = [x_p, w_p, mask_arg]
    if has_bias:
        bias_row = _pad2(bias.reshape(1, out_features), 1, out_pad)
        in_specs.append(pl.BlockSpec((1, tn), lambda b, n, k: (0, n)))
        args.append(bias_row)

    # Exact f32 parity with the torch reference; bf16 operands keep the native
    # bf16 MXU path with the f32 accumulator.
    precision = (lax.Precision.HIGHEST
                 if (x.dtype == jnp.float32 and weight.dtype == jnp.float32)
                 else lax.Precision.DEFAULT)
    kernel = _make_kernel(coarse, has_bias, precision)

    itemsize = x_p.dtype.itemsize
    nb, nn, _ = grid
    bytes_accessed = (x_p.size * itemsize * nn                         # x re-streamed per out-tile
                      + w_p.size * w_p.dtype.itemsize * nb             # weight re-streamed per batch-tile
                      + mask_arg.size * mask_arg.dtype.itemsize * (nb if not coarse else 1)
                      + (bias_row.size * bias_row.dtype.itemsize if has_bias else 0)
                      + b_pad * out_pad * itemsize)
    cost = pl.CostEstimate(
        flops=2 * b_pad * in_pad * out_pad,
        transcendentals=0,
        bytes_accessed=int(bytes_accessed))

    out_p = pl.pallas_call(
        kernel,
        out_shape=jax.ShapeDtypeStruct((b_pad, out_pad), x.dtype),
        grid_spec=pltpu.PrefetchScalarGridSpec(
            num_scalar_prefetch=0,
            grid=grid,                                        # (batch, out, K) — reduction last
            in_specs=in_specs,
            out_specs=pl.BlockSpec((tb, tn), lambda b, n, k: (b, n)),
            scratch_shapes=[pltpu.VMEM((tb, tn), jnp.float32)],
        ),
        compiler_params=pltpu.CompilerParams(
            dimension_semantics=("parallel", "parallel", "arbitrary"),
            vmem_limit_bytes=32 * 1024 * 1024),
        cost_estimate=cost,
    )(*args)

    if b_pad != B or out_pad != out_features:
        out_p = out_p[:B, :out_features]
    return out_p


if __name__ == "__main__":
    key = jax.random.PRNGKey(0)
    kx, kw, kb, km, kx2, kw2, kb2, km2, kx3, kw3, km3 = jax.random.split(key, 11)

    # --- 1) fine-grained (out, in) mask, tiny shapes (single grid step) ---
    in_features, out_features, batch = 32, 16, 8
    stdv = 1.0 / (in_features ** 0.5)
    weight = jax.random.uniform(kw, (out_features, in_features),
                                minval=-stdv, maxval=stdv, dtype=jnp.float32)
    bias = jax.random.uniform(kb, (out_features,),
                              minval=-stdv, maxval=stdv, dtype=jnp.float32)
    mask = (jax.random.uniform(km, (out_features, in_features)) > 0.5).astype(jnp.float32)
    x = jax.random.normal(kx, (batch, in_features), dtype=jnp.float32)

    out = jax.block_until_ready(linear_sparse(x, weight, mask, bias))
    ref = jnp.matmul(x, (weight * mask).T, precision=lax.Precision.HIGHEST) + bias
    assert out.shape == (batch, out_features)
    assert jnp.allclose(out, ref, atol=1e-5, rtol=1e-5), "fine-grained mismatch"

    # --- 2) coarse-grained (out, 1) mask path (post-matmul row scaling) ---
    cmask = (jax.random.uniform(km2, (out_features, 1)) > 0.5).astype(jnp.float32)
    out_c = jax.block_until_ready(linear_sparse(x, weight, cmask, bias))
    ref_c = jnp.matmul(x, (weight * cmask).T, precision=lax.Precision.HIGHEST) + bias
    assert jnp.allclose(out_c, ref_c, atol=1e-5, rtol=1e-5), "coarse-grained mismatch"

    # --- 3) tiled 3-D grid (batch, out, K) = (2, 2, 2) with the accumulator ---
    b2, in2, out2 = 512, 1024, 512
    stdv2 = 1.0 / (in2 ** 0.5)
    w2 = jax.random.uniform(kw2, (out2, in2), minval=-stdv2, maxval=stdv2, dtype=jnp.float32)
    bias2 = jax.random.uniform(kb2, (out2,), minval=-stdv2, maxval=stdv2, dtype=jnp.float32)
    m2 = (jax.random.uniform(km, (out2, in2)) > 0.5).astype(jnp.float32)
    x2 = jax.random.normal(kx2, (b2, in2), dtype=jnp.float32)

    out2v = jax.block_until_ready(linear_sparse(x2, w2, m2, bias2))
    ref2 = jnp.matmul(x2, (w2 * m2).T, precision=lax.Precision.HIGHEST) + bias2
    assert jnp.allclose(out2v, ref2, atol=1e-4, rtol=1e-4), "tiled mismatch"

    # --- 4) non-divisible dims (padding path), no bias ---
    b3, in3, out3 = 8, 1300, 384                 # pads to in=1536 (tk=512), out=512 (tn=256)
    stdv3 = 1.0 / (in3 ** 0.5)
    w3 = jax.random.uniform(kw3, (out3, in3), minval=-stdv3, maxval=stdv3, dtype=jnp.float32)
    m3 = (jax.random.uniform(km3, (out3, in3)) > 0.5).astype(jnp.float32)
    x3 = jax.random.normal(kx3, (b3, in3), dtype=jnp.float32)

    out3v = jax.block_until_ready(linear_sparse(x3, w3, m3, bias=None))
    ref3 = jnp.matmul(x3, (w3 * m3).T, precision=lax.Precision.HIGHEST)
    assert out3v.shape == (b3, out3)
    assert jnp.allclose(out3v, ref3, atol=1e-4, rtol=1e-4), "padded / no-bias mismatch"

    print("KERNEL_OK")
</pallas_src>

<mosaic_0001>
module attributes {stable_mosaic.version = 11 : i64} {
  func.func @kernel(%arg0: i32, %arg1: i32, %arg2: i32, %arg3: memref<8x32xf32, #tpu.memory_space<vmem>>, %arg4: memref<16x32xf32, #tpu.memory_space<vmem>>, %arg5: memref<16x32xi8, #tpu.memory_space<vmem>>, %arg6: memref<1x16xf32, #tpu.memory_space<vmem>>, %arg7: memref<8x16xf32, #tpu.memory_space<vmem>>, %arg8: memref<8x16xf32, #tpu.memory_space<vmem>>) attributes {dimension_semantics = [#tpu.dimension_semantics<parallel>, #tpu.dimension_semantics<parallel>, #tpu.dimension_semantics<arbitrary>], iteration_bounds = array<i64: 1, 1, 1>, scalar_prefetch = 0 : i64, scratch_operands = 1 : i64, tpu.core_type = #tpu.core_type<tc>, window_params = [{transform_indices = @transform_0, window_bounds = array<i64: 8, 32>}, {transform_indices = @transform_1, window_bounds = array<i64: 16, 32>}, {transform_indices = @transform_2, window_bounds = array<i64: 16, 32>}, {transform_indices = @transform_3, window_bounds = array<i64: 1, 16>}, {transform_indices = @transform_4, window_bounds = array<i64: 8, 16>}]} {
    %c0_i32 = arith.constant 0 : i32
    %0 = arith.cmpi eq, %arg2, %c0_i32 : i32
    %1 = arith.extui %0 : i1 to i32
    %c0_i32_0 = arith.constant 0 : i32
    %2 = arith.cmpi ne, %1, %c0_i32_0 : i32
    scf.if %2 {
      %cst_12 = arith.constant 0.000000e+00 : f32
      %15 = vector.broadcast %cst_12 : f32 to vector<8x16xf32>
      %c0_13 = arith.constant 0 : index
      %c0_14 = arith.constant 0 : index
      %16 = vector.load %arg8[%c0_13, %c0_14] : memref<8x16xf32, #tpu.memory_space<vmem>>, vector<8x16xf32>
      tpu.vector_store %arg8[%c0_13, %c0_14], %15 {strides = array<i32>} : memref<8x16xf32, #tpu.memory_space<vmem>>, vector<8x16xf32>,
    } else {
    }
    %c0 = arith.constant 0 : index
    %c0_1 = arith.constant 0 : index
    %3 = vector.load %arg4[%c0, %c0_1] : memref<16x32xf32, #tpu.memory_space<vmem>>, vector<16x32xf32>
    %c0_2 = arith.constant 0 : index
    %c0_3 = arith.constant 0 : index
    %4 = vector.load %arg5[%c0_2, %c0_3] : memref<16x32xi8, #tpu.memory_space<vmem>>, vector<16x32xi8>
    %5 = arith.sitofp %4 : vector<16x32xi8> to vector<16x32xf32>
    %6 = arith.mulf %3, %5 : vector<16x32xf32>
    %c0_4 = arith.constant 0 : index
    %c0_5 = arith.constant 0 : index
    %7 = vector.load %arg8[%c0_4, %c0_5] : memref<8x16xf32, #tpu.memory_space<vmem>>, vector<8x16xf32>
    %c0_6 = arith.constant 0 : index
    %c0_7 = arith.constant 0 : index
    %8 = vector.load %arg3[%c0_6, %c0_7] : memref<8x32xf32, #tpu.memory_space<vmem>>, vector<8x32xf32>
    %cst = arith.constant dense<0.000000e+00> : vector<8x16xf32>
    %9 = tpu.matmul %8, %6, %cst {dimension_numbers = #tpu.dot_dimension_numbers<[1], [1], [0], [0], [0, 0, 1, 0], [], []>, precision = #tpu.contract_precision<fp32>} : vector<8x32xf32>, vector<16x32xf32>, vector<8x16xf32> -> vector<8x16xf32>
    %10 = arith.addf %7, %9 : vector<8x16xf32>
    %c0_8 = arith.constant 0 : index
    %c0_9 = arith.constant 0 : index
    %11 = vector.load %arg8[%c0_8, %c0_9] : memref<8x16xf32, #tpu.memory_space<vmem>>, vector<8x16xf32>
    tpu.vector_store %arg8[%c0_8, %c0_9], %10 {strides = array<i32>} : memref<8x16xf32, #tpu.memory_space<vmem>>, vector<8x16xf32>,
    %c0_i32_10 = arith.constant 0 : i32
    %12 = arith.cmpi eq, %arg2, %c0_i32_10 : i32
    %13 = arith.extui %12 : i1 to i32
    %c0_i32_11 = arith.constant 0 : i32
    %14 = arith.cmpi ne, %13, %c0_i32_11 : i32
    scf.if %14 {
      %c0_12 = arith.constant 0 : index
      %c0_13 = arith.constant 0 : index
      %15 = vector.load %arg8[%c0_12, %c0_13] : memref<8x16xf32, #tpu.memory_space<vmem>>, vector<8x16xf32>
      %c0_14 = arith.constant 0 : index
      %c0_15 = arith.constant 0 : index
      %16 = vector.load %arg6[%c0_14, %c0_15] : memref<1x16xf32, #tpu.memory_space<vmem>>, vector<1x16xf32>
      %17 = vector.broadcast %16 : vector<1x16xf32> to vector<8x16xf32>
      %18 = arith.addf %15, %17 : vector<8x16xf32>
      %c0_16 = arith.constant 0 : index
      %c0_17 = arith.constant 0 : index
      %19 = vector.load %arg7[%c0_16, %c0_17] : memref<8x16xf32, #tpu.memory_space<vmem>>, vector<8x16xf32>
      tpu.vector_store %arg7[%c0_16, %c0_17], %18 {strides = array<i32>} : memref<8x16xf32, #tpu.memory_space<vmem>>, vector<8x16xf32>,
    } else {
    }
    return
  }
  func.func @transform_0(%arg0: i32, %arg1: i32, %arg2: i32) -> (i32, i32) {
    %c0_i32 = arith.constant 0 : i32
    return %arg0, %arg2 : i32, i32
  }
  func.func @transform_1(%arg0: i32, %arg1: i32, %arg2: i32) -> (i32, i32) {
    %c0_i32 = arith.constant 0 : i32
    return %arg1, %arg2 : i32, i32
  }
  func.func @transform_2(%arg0: i32, %arg1: i32, %arg2: i32) -> (i32, i32) {
    %c0_i32 = arith.constant 0 : i32
    return %arg1, %arg2 : i32, i32
  }
  func.func @transform_3(%arg0: i32, %arg1: i32, %arg2: i32) -> (i32, i32) {
    %c0_i32 = arith.constant 0 : i32
    %c0_i32_0 = arith.constant 0 : i32
    return %c0_i32, %arg1 : i32, i32
  }
  func.func @transform_4(%arg0: i32, %arg1: i32, %arg2: i32) -> (i32, i32) {
    %c0_i32 = arith.constant 0 : i32
    return %arg0, %arg1 : i32, i32
  }
}

</mosaic_0001>

<bundles_post_ra>
// kernel: tpu_custom_call.1
= control target key start
LH: loop header
LB: loop body
LE: loop exit
PB: predicated region body
PF: predicated region fallthrough
CT: control target
= control target key end

     0   :  { %9 = vsyncpa [#allocation4], 0  ;;  %s449_s0 = inlined_call_operand.hbm [shape: f32[8,32], index: 0, kind: input, shape index: {}]   ;;  %s450_s1 = inlined_call_operand.hbm [shape: f32[16,32], index: 1, kind: input, shape index: {}]   ;;  %s451_s2 = inlined_call_operand.hbm [shape: s8[16,32], index: 2, kind: input, shape index: {}]   ;;  %s452_s3 = inlined_call_operand.vmem [shape: f32[1,16], index: 3, kind: input, shape index: {}]   ;;  %s453_s4 = inlined_call_operand.hbm [shape: f32[8,16], index: 4, kind: output, shape index: {}]  }
   0x1   :  { %10 = vsyncpa [#allocation7], 0  ;;  %s27_s17 = sshll.u32 %s450_s1, 4  ;;  %s28_s17 = int_to_ptr.hbm [resolvable:$true] %s27_s17 }
   0x2   :  { %11 = vsyncpa [#allocation5], 0  ;;  %s397_s18 = smov [#allocation6]   ;;  %s17_s22 = sshll.u32 %s449_s0, 4  ;;  %s18_s22 = int_to_ptr.hbm [resolvable:$true] %s17_s22 }
   0x3   :  { %s29_s19 = sshll.u32 %s397_s18, 4  ;;  %s398_s23 = smov 128   ;;  %s30_s19 = int_to_ptr.vmem [resolvable:$true] %s29_s19 }
   0x4   :  { %s399_s24 = smov 8   ;;  %s400_s25 = smov [#allocation3]  }
   0x5   :  { %35 = dma.hbm_to_vmem [thread:$0]  %s28_s17, 256, %s30_s19, [#allocation7], %s398_s23, %s398_s23, %s399_s24  }
   0x6   :  { %s19_s26 = sshll.u32 %s400_s25, 4  ;;  %s40_s29 = sshll.u32 %s451_s2, 4  ;;  %s20_s26 = int_to_ptr.vmem [resolvable:$true] %s19_s26  ;;  %s41_s29 = int_to_ptr.hbm [resolvable:$true] %s40_s29 }
   0x7   :  { %22 = dma.hbm_to_vmem [thread:$0]  %s18_s22, 128, %s20_s26, [#allocation4]  }
   0x8   :  { %s401_s1 = smov [#allocation8]   ;;  %s402_s5 = smov 32  }
   0x9   :  { %s42_s30 = sshll.u32 %s401_s1, 4  ;;  %s403_s6 = smov 2   ;;  %s43_s30 = int_to_ptr.vmem [resolvable:$true] %s42_s30 }
   0xa   :  { %48 = dma.hbm_to_vmem [thread:$0]  %s41_s29, 64, %s43_s30, [#allocation7], %s402_s5, %s402_s5, %s403_s6  }
   0xb   :  { %391 = dma.done.wait [#allocation4], 128  }
   0xc   :  { %392 = vsyncadd [#allocation4], 4294967168 }
   0xd   :  { %393 = dma.done.wait [#allocation7], 320  }
   0xe   :  { %394 = vsyncadd [#allocation7], 4294966976  ;;  %v282_v0 = vld [vmem:[#allocation8] sm:$0xf]   ;;  %vm81_vm0 = vcmask 261120   ;;  %v80_v3 = vld [vmem:[#allocation3] sm:$0xff] }
   0xf   :  { %v284_v1 = vunpack.c.1.s8 %v282_v0  ;;  %v283_v2 = vunpack.c.0.s8 %v282_v0  ;;  %v70_v4 = vld [vmem:[#allocation6 + $0x8] sm:$0xff]  ;;  %v69_v5 = vld [vmem:[#allocation6] sm:$0xff]  ;;  %v83_v6 = vsel %vm81_vm0, %v80_v3, 0  ;;  %vm67_vm1 = vcmask 130048   ;;  %v294_v42 = vld [vmem:[%s452_s3] ss:$0 sm:$0xff] }
  0x10   :  { %v109_v9 = vand.u32 4294901760, %v83_v6  ;;  %v404_v28 = vmov 0.0   ;;  %s405_s7 = smov [#allocation9]   ;;  %s270_s11 = sshll.u32 %s453_s4, 4  ;;  %s271_s11 = int_to_ptr.hbm [resolvable:$true] %s270_s11 }
  0x11   :  { %v76_v7 = vcvt.s32.f32 %v284_v1  ;;  %v75_v8 = vcvt.s32.f32 %v283_v2  ;;  %68 = vst.msk [vmem:[#allocation2] sm:$0xff] %vm67_vm1, %v404_v28  ;;  %s268_s8 = sshll.u32 %s405_s7, 4  ;;  %s269_s8 = int_to_ptr.vmem [resolvable:$true] %s268_s8 }
  0x12   :  { %v110_v12 = vsub.f32 %v83_v6, %v109_v9 }
  0x13   :  { %v78_v10 = vmul.f32 %v76_v7, %v70_v4  ;;  %v77_v11 = vmul.f32 %v75_v8, %v69_v5 }
  0x14   :  { %v111_v15 = vand.u32 4294901760, %v110_v12 }
  0x15   :  { %v89_v13 = vsel %vm81_vm0, %v78_v10, 0  ;;  %v86_v14 = vsel %vm81_vm0, %v77_v11, 0 }
  0x16   :  { %v105_v16 = vand.u32 4294901760, %v89_v13  ;;  %v107_v17 = vand.u32 4294901760, %v86_v14  ;;  %v112_v18 = vsub.f32 %v110_v12, %v111_v15 }
  0x18   :  { %v133_v19 = vsub.f32 %v89_v13, %v105_v16  ;;  %106 = vmatpush.xpose.msra.mxu0 %v105_v16  ;;  %190 = vmatpush.xpose.msra.mxu3 %v105_v16  ;;  %v139_v20 = vsub.f32 %v86_v14, %v107_v17  ;;  %v113_v23 = vand.u32 4294901760, %v112_v18  ;;  %v79_v38 = vld [vmem:[#allocation2] sm:$0xff] }
  0x1a   :  { %165 = vmatpush.xpose.msra.mxu2 %v133_v19  ;;  %v134_v21 = vand.u32 4294901760, %v133_v19  ;;  %v140_v22 = vand.u32 4294901760, %v139_v20 }
  0x1c   :  { %v135_v24 = vsub.f32 %v133_v19, %v134_v21  ;;  %108 = vmatpush.xpose.msra.mxu0 %v107_v17  ;;  %192 = vmatpush.xpose.msra.mxu3 %v107_v17  ;;  %v141_v25 = vsub.f32 %v139_v20, %v140_v22 }
  0x1e   :  { %v136_v26 = vand.u32 4294901760, %v135_v24  ;;  %168 = vmatpush.xpose.msra.mxu2 %v139_v20  ;;  %v142_v27 = vand.u32 4294901760, %v141_v25 }
  0x1f   :  { %114 = vmatmul.f32.vlgmr.msra.gmra.mxu0 %v113_v23  ;;  %196 = vmatmul.f32.vlgmr.msra.gmra.mxu3 %v111_v15 }
  0x20   :  { %217 = vmatpush.xpose.msrb.mxu0 %v134_v21  ;;  %137 = vmatpush.xpose.msra.mxu1 %v136_v26 }
  0x21   :  { %171 = vmatmul.f32.vlgmr.msra.gmra.mxu2 %v110_v12 }
  0x24   :  { %221 = vmatpush.xpose.msrb.mxu0 %v140_v22  ;;  %143 = vmatpush.xpose.msra.mxu1 %v142_v27 }
  0x27   :  { %145 = vmatmul.f32.vlgmr.msra.gmra.mxu1 %v109_v9  ;;  %223 = vmatmul.f32.vlgmr.msrb.gmra.mxu0 %v109_v9 }
  0x28   :  { %242 = vmatpush.xpose.msrb.mxu1 %v105_v16 }
  0x2c   :  { %244 = vmatpush.xpose.msrb.mxu1 %v107_v17 }
  0x2f   :  { %246 = vmatmul.f32.vlgmr.msrb.gmra.mxu1 %v109_v9 }
  0x9c   :  { %v115_v29 = vpop.f32.mrf.mxu0 }
  0xa2   :  { %v197_v33 = vpop.f32.mrf.mxu3 }
  0xa4   :  { %v146_v30 = vpop.f32.mrf.mxu1  ;;  %v172_v31 = vpop.f32.mrf.mxu2 }
  0xa5   :  { %v147_v32 = vadd.f32 %v146_v30, %v115_v29  ;;  %v224_v35 = vpop.f32.mrf.mxu0 }
  0xa7   :  { %v173_v34 = vadd.f32 %v172_v31, %v147_v32 }
  0xa9   :  { %v198_v36 = vadd.f32 %v197_v33, %v173_v34 }
  0xab   :  { %v225_v37 = vadd.f32 %v224_v35, %v198_v36 }
  0xac   :  { %v247_v39 = vpop.f32.mrf.mxu1 }
  0xad   :  { %v248_v40 = vadd.f32 %v247_v39, %v225_v37 }
  0xaf   :  { %v250_v41 = vadd.f32 %v248_v40, %v79_v38 }
  0xb1   :  { %252 = vst.msk [vmem:[#allocation2] sm:$0xff] %vm67_vm1, %v250_v41 }
  0xb8   :  { %v256_v43 = vld [vmem:[#allocation2] sm:$0xff] }
  0xb9   :  { %v261_v44 = vadd.f32 %v294_v42, %v256_v43 }
  0xbb   :  { %262 = vst.msk [vmem:[#allocation9] sm:$0xff] %vm67_vm1, %v261_v44 }
  0xbc   :  { %273 = dma.vmem_to_hbm [thread:$0]  %s269_s8, 128, %s271_s11, [#allocation5]  }
  0xbd   :  { %395 = dma.done.wait [#allocation5], 128  }
  0xbe   :  { %396 = vsyncadd [#allocation5], 4294967168 }
  0xbf   :  { %278 = vsyncpa [#allocation4], 1 }
  0xc0   :  { %279 = vsyncpa [#allocation7], 1 }
  0xc1   :  { %280 = vsyncpa [#allocation5], 1 }

</bundles_post_ra>
